<compile_context>
chip_gen: v7x
topology: tpu7x:2x2x1
jax: 0.10.0
libtpu: 0.0.40
codegen_flags: <defaults>
</compile_context>

<pallas_src>
import functools

import numpy as np
import jax
import jax.numpy as jnp
from jax import lax
from jax.experimental import pallas as pl
from jax.experimental.pallas import tpu as pltpu


def _round_up(x, m):
    return ((x + m - 1) // m) * m


def _round_down(x, m):
    return (x // m) * m


# ----------------------------------------------------------------------------
# Host-side glue: replicate SRP_map.__init__ (tau0), build pruned one-hot S.
# ----------------------------------------------------------------------------
def build_tau0(N, K, resTheta, resPhi, rn, fs, c=343.0, thetaMax=np.pi / 2):
    theta = np.linspace(0.0, thetaMax, resTheta)
    phi = np.linspace(-np.pi, np.pi, resPhi + 1)[:-1]
    IMTDF = np.empty((resTheta, resPhi, N, N))
    for k in range(N):
        for l in range(N):
            r = np.stack(
                [
                    np.outer(np.sin(theta), np.cos(phi)),
                    np.outer(np.sin(theta), np.sin(phi)),
                    np.tile(np.cos(theta), [resPhi, 1]).transpose(),
                ],
                axis=2,
            )
            IMTDF[:, :, k, l] = np.dot(r, rn[l, :] - rn[k, :]) / c
    tau = np.concatenate(
        [np.arange(0, K // 2 + 1), np.arange(-K // 2 + 1, 0)]
    ) / float(fs)
    tau0 = np.zeros_like(IMTDF, dtype=np.int64)
    for k in range(N):
        for l in range(N):
            for i in range(resTheta):
                for j in range(resPhi):
                    tau0[i, j, k, l] = int(np.argmin(np.abs(IMTDF[i, j, k, l] - tau)))
    tau0[tau0 > K // 2] -= K
    tau0 = tau0.transpose([2, 3, 0, 1])          # (N, N, resTheta, resPhi)
    tau0[tau0 < 0] += K                           # wrap negative lags (forward step)
    return tau0


def build_selection_matrix(tau0, K):
    """Pruned one-hot S s.t. x_flat[:, used] @ S == gather-sum over all pairs.

    Returns (S[PK_used, TP] float32, used[PK_used] int32 indices into N*N*K).
    """
    N = tau0.shape[0]
    TP = tau0.shape[2] * tau0.shape[3]
    tau0_flat = tau0.reshape(N * N, TP)
    S = np.zeros((N * N, K, TP), dtype=np.float32)
    cols = np.arange(TP)
    for p in range(N * N):
        S[p, tau0_flat[p], cols] = 1.0
    S = S.reshape(N * N * K, TP)
    used = np.flatnonzero(S.any(axis=1)).astype(np.int32)   # prune all-zero rows
    return S[used], used


# ----------------------------------------------------------------------------
# VMEM sizing: budget / ceiling from the actual chip, tile auto-fit.
# ----------------------------------------------------------------------------
def _vmem_caps():
    try:
        cap = int(pltpu.get_tpu_info().vmem_capacity_bytes)  # 128 MiB v5e/v6e, 64 MiB v7x
    except Exception:
        cap = 64 << 20                                       # conservative fallback
    budget = max(16 << 20, int(cap * 0.75))   # tile working-set budget
    ceiling = max(32 << 20, int(cap * 0.90))  # scoped-vmem limit handed to Mosaic
    return budget, ceiling


def _fit_tiles(B_pad, PK, TP, budget, b_tile_max, pk_tile_max, tp_tile_max,
               x_bytes, s_bytes, b_align):
    b_tile = min(B_pad, max(b_align, _round_up(b_tile_max, b_align)))
    pk_tile = min(_round_up(PK, 128), max(128, _round_down(pk_tile_max, 128)))
    tp_tile = min(_round_up(TP, 256), max(256, _round_down(tp_tile_max, 256)))

    def need(bt, pkt, tpt):
        # Double-buffered streamed x / S tiles + double-buffered f32 output
        # block (which is also the accumulator — no extra scratch).
        return 2 * bt * pkt * x_bytes + 2 * pkt * tpt * s_bytes + 2 * bt * tpt * 4

    # Auto-shrink to fit the chip's VMEM budget.  Priority keeps b_tile (the
    # arithmetic-intensity lever) large: tp down to 2048 first (v7x path),
    # then pk down to 256, then tp/pk to their minima, b_tile last.
    while need(b_tile, pk_tile, tp_tile) > budget:
        if tp_tile > 2048:
            tp_tile = max(2048, _round_down(tp_tile // 2, 256))
        elif pk_tile > 256:
            pk_tile = max(256, _round_down(pk_tile // 2, 128))
        elif tp_tile > 256:
            tp_tile = max(256, _round_down(tp_tile // 2, 256))
        elif pk_tile > 128:
            pk_tile = 128
        elif b_tile > b_align:
            b_tile = max(b_align, _round_down(b_tile // 2, b_align))
        else:
            break
    return b_tile, pk_tile, tp_tile, need(b_tile, pk_tile, tp_tile)


# ----------------------------------------------------------------------------
# Pallas kernel: o[b, tp] += x[b, k] @ S[k, tp], normalize at the last k step.
# ----------------------------------------------------------------------------
def srp_map_kernel(x_ref, s_ref, o_ref, *, tp_valid, normalize_in_kernel):
    k = pl.program_id(2)

    @pl.when(k == 0)
    def _init():
        o_ref[...] = jnp.zeros_like(o_ref)

    # Output block index is constant along k -> o_ref stays VMEM-resident and
    # acts as the f32 accumulator (no scratch, no finalize copy).
    o_ref[...] += jnp.dot(x_ref[...], s_ref[...],
                          preferred_element_type=jnp.float32)

    if normalize_in_kernel:
        tp_block = o_ref.shape[-1]

        @pl.when(k == pl.num_programs(2) - 1)
        def _finalize():
            maps = o_ref[...]
            if tp_valid < tp_block:
                # Exclude zero-padded lanes from the mean / max.
                col = lax.broadcasted_iota(jnp.int32, maps.shape, 1)
                valid = col < tp_valid
                mean = jnp.sum(jnp.where(valid, maps, 0.0), axis=-1,
                               keepdims=True) * (1.0 / tp_valid)
                maps = maps - mean + 1e-12
                mx = jnp.max(jnp.where(valid, maps, -jnp.inf), axis=-1,
                             keepdims=True)
            else:
                mean = jnp.mean(maps, axis=-1, keepdims=True)
                maps = maps - mean + 1e-12
                mx = jnp.max(maps, axis=-1, keepdims=True)
            # Exact divide: runs once per output block, approx reciprocal buys
            # nothing here and costs accuracy.
            o_ref[...] = maps / mx


def srp_map_forward(x, S, used_idx, resTheta, resPhi, normalize=True,
                    precise=False, b_tile_max=512, pk_tile_max=1024,
                    tp_tile_max=8192):
    """SRP-PHAT maps from GCCs (matches SRP_map.forward).

    x: (B, N, N, K) GCCs.  S: (PK, TP) pruned one-hot selection matrix.
    used_idx: (PK,) int32 indices into the flattened N*N*K axis of x.
    Returns (B, resTheta, resPhi) float32.

    Tuning notes: v6e wants b_tile ~512-768 (default); v5e ~256 is enough —
    grow pk_tile instead; on v7x prefer >=2 blocks along the parallel b/tp
    axes (e.g. tp_tile_max = TP//2) so both TensorCores are engaged.
    """
    B, N, _, K = x.shape
    PK = int(S.shape[0])
    TP = resTheta * resPhi
    assert S.shape[1] == TP and used_idx.shape[0] == PK

    x_dtype = jnp.float32 if precise else jnp.bfloat16
    s_dtype = jnp.float32 if precise else jnp.bfloat16   # S is 0/1 -> exact in bf16
    x_bytes = jnp.dtype(x_dtype).itemsize
    s_bytes = jnp.dtype(s_dtype).itemsize
    b_align = 16 if x_bytes == 2 else 8                  # bf16 packs 16 sublanes/vreg

    budget, ceiling = _vmem_caps()
    B_pad0 = _round_up(B, b_align)
    b_tile, pk_tile, tp_tile, need = _fit_tiles(
        B_pad0, PK, TP, budget, b_tile_max, pk_tile_max, tp_tile_max,
        x_bytes, s_bytes, b_align)

    B_pad = _round_up(B_pad0, b_tile)
    PK_pad = _round_up(PK, pk_tile)
    TP_pad = _round_up(TP, tp_tile)
    b_blocks = B_pad // b_tile
    tp_blocks = TP_pad // tp_tile
    pk_blocks = PK_pad // pk_tile
    normalize_in_kernel = bool(normalize) and tp_blocks == 1

    # Gather only the used (pair, lag) columns of x (host-pruned S rows), then
    # zero-pad: padded rows/cols contribute nothing to the accumulated sum.
    x_flat = jnp.take(x.reshape(B, N * N * K).astype(x_dtype),
                      jnp.asarray(used_idx, jnp.int32), axis=1)
    x_p = jnp.pad(x_flat, ((0, B_pad - B), (0, PK_pad - PK)))
    S_p = jnp.pad(jnp.asarray(S, dtype=s_dtype),
                  ((0, PK_pad - PK), (0, TP_pad - TP)))

    vmem_limit = int(min(ceiling, max(need + (8 << 20), 32 << 20)))

    out = pl.pallas_call(
        functools.partial(srp_map_kernel, tp_valid=TP,
                          normalize_in_kernel=normalize_in_kernel),
        out_shape=jax.ShapeDtypeStruct((B_pad, TP_pad), jnp.float32),
        grid=(b_blocks, tp_blocks, pk_blocks),            # reduction (PK) innermost
        in_specs=[
            pl.BlockSpec((b_tile, pk_tile), lambda b, t, k: (b, k)),
            pl.BlockSpec((pk_tile, tp_tile), lambda b, t, k: (k, t)),
        ],
        out_specs=pl.BlockSpec((b_tile, tp_tile), lambda b, t, k: (b, t)),
        compiler_params=pltpu.CompilerParams(
            dimension_semantics=("parallel", "parallel", "arbitrary"),
            vmem_limit_bytes=vmem_limit,
        ),
    )(x_p, S_p)

    maps = out[:B, :TP]
    if normalize and not normalize_in_kernel:
        # TP is tiled across the grid (e.g. v7x large maps): normalize outside.
        mean = jnp.mean(maps, axis=-1, keepdims=True)
        maps = maps - mean + 1e-12
        maps = maps / jnp.max(maps, axis=-1, keepdims=True)
    return maps.reshape(B, resTheta, resPhi)


# ----------------------------------------------------------------------------
# Pure-numpy reference mirroring the PyTorch forward (gather + normalize).
# ----------------------------------------------------------------------------
def srp_map_reference(x, tau0, resTheta, resPhi, normalize=True):
    xn = np.asarray(x, dtype=np.float32)
    B, N, _, K = xn.shape
    maps = np.zeros((B, resTheta, resPhi), dtype=np.float32)
    for n in range(N):
        for m in range(N):
            maps += xn[:, n, m, tau0[n, m]]
    if normalize:
        maps -= maps.mean(axis=(-2, -1), keepdims=True)
        maps += 1e-12
        maps /= maps.max(axis=(-2, -1), keepdims=True)
    return maps


if __name__ == "__main__":
    fs = 16000.0
    N, K = 4, 64
    # Deterministic microphone geometry: circular array, radius 25 cm.
    ang = 2.0 * np.pi * np.arange(N) / N
    rn = np.stack([0.25 * np.cos(ang), 0.25 * np.sin(ang), np.zeros(N)], axis=1)

    key = jax.random.PRNGKey(0)
    kA, kB = jax.random.split(key)

    # --- Config A: bf16 streaming path, masked in-kernel normalization,
    #     multi-step PK reduction (pk_tile_max=128 only to exercise the
    #     accumulator init/finalize path at toy scale; production uses 256+).
    B, resTheta, resPhi = 2, 8, 20
    tau0 = build_tau0(N, K, resTheta, resPhi, rn, fs)
    S_np, used = build_selection_matrix(tau0, K)
    x = jax.random.normal(kA, (B, N, N, K), dtype=jnp.float32)
    maps = srp_map_forward(x, S_np, used, resTheta, resPhi, normalize=True,
                           pk_tile_max=128)
    maps = jax.block_until_ready(maps)
    ref = srp_map_reference(np.asarray(x), tau0, resTheta, resPhi, True)
    np.testing.assert_allclose(np.asarray(maps), ref, rtol=2e-2, atol=2e-2)

    # --- Config B: f32 precise path, TP tiled across the grid (v7x-style),
    #     normalization done outside the kernel.
    B2, resTheta2, resPhi2 = 3, 8, 64
    tau0_2 = build_tau0(N, K, resTheta2, resPhi2, rn, fs)
    S2_np, used2 = build_selection_matrix(tau0_2, K)
    x2 = jax.random.normal(kB, (B2, N, N, K), dtype=jnp.float32)
    maps2 = srp_map_forward(x2, S2_np, used2, resTheta2, resPhi2, normalize=True,
                            tp_tile_max=256, precise=True)
    maps2 = jax.block_until_ready(maps2)
    ref2 = srp_map_reference(np.asarray(x2), tau0_2, resTheta2, resPhi2, True)
    np.testing.assert_allclose(np.asarray(maps2), ref2, rtol=1e-3, atol=1e-3)

    print("KERNEL_OK")
</pallas_src>

<mosaic_0001>
module attributes {stable_mosaic.version = 11 : i64} {
  func.func @srp_map_kernel(%arg0: i32, %arg1: i32, %arg2: i32, %arg3: memref<16x128xbf16, #tpu.memory_space<vmem>>, %arg4: memref<128x256xbf16, #tpu.memory_space<vmem>>, %arg5: memref<16x256xf32, #tpu.memory_space<vmem>>) attributes {dimension_semantics = [#tpu.dimension_semantics<parallel>, #tpu.dimension_semantics<parallel>, #tpu.dimension_semantics<arbitrary>], iteration_bounds = array<i64: 1, 1, 4>, scalar_prefetch = 0 : i64, scratch_operands = 0 : i64, tpu.core_type = #tpu.core_type<tc>, window_params = [{transform_indices = @transform_0, window_bounds = array<i64: 16, 128>}, {transform_indices = @transform_1, window_bounds = array<i64: 128, 256>}, {transform_indices = @transform_2, window_bounds = array<i64: 16, 256>}]} {
    %c0_i32 = arith.constant 0 : i32
    %0 = arith.cmpi eq, %arg2, %c0_i32 : i32
    %1 = arith.extui %0 : i1 to i32
    %c0_i32_0 = arith.constant 0 : i32
    %2 = arith.cmpi ne, %1, %c0_i32_0 : i32
    scf.if %2 {
      %cst_9 = arith.constant 0.000000e+00 : f32
      %12 = vector.broadcast %cst_9 : f32 to vector<16x256xf32>
      %c0_10 = arith.constant 0 : index
      %c0_11 = arith.constant 0 : index
      %13 = vector.load %arg5[%c0_10, %c0_11] : memref<16x256xf32, #tpu.memory_space<vmem>>, vector<16x256xf32>
      tpu.vector_store %arg5[%c0_10, %c0_11], %12 {strides = array<i32>} : memref<16x256xf32, #tpu.memory_space<vmem>>, vector<16x256xf32>,
    } else {
    }
    %c0 = arith.constant 0 : index
    %c0_1 = arith.constant 0 : index
    %3 = vector.load %arg5[%c0, %c0_1] : memref<16x256xf32, #tpu.memory_space<vmem>>, vector<16x256xf32>
    %c0_2 = arith.constant 0 : index
    %c0_3 = arith.constant 0 : index
    %4 = vector.load %arg3[%c0_2, %c0_3] : memref<16x128xbf16, #tpu.memory_space<vmem>>, vector<16x128xbf16>
    %c0_4 = arith.constant 0 : index
    %c0_5 = arith.constant 0 : index
    %5 = vector.load %arg4[%c0_4, %c0_5] : memref<128x256xbf16, #tpu.memory_space<vmem>>, vector<128x256xbf16>
    %cst = arith.constant dense<0.000000e+00> : vector<16x256xf32>
    %6 = tpu.matmul %4, %5, %cst {dimension_numbers = #tpu.dot_dimension_numbers<[1], [0], [0], [1], [0, 0, 1, 1], [], []>} : vector<16x128xbf16>, vector<128x256xbf16>, vector<16x256xf32> -> vector<16x256xf32>
    %7 = arith.addf %3, %6 : vector<16x256xf32>
    %c0_6 = arith.constant 0 : index
    %c0_7 = arith.constant 0 : index
    %8 = vector.load %arg5[%c0_6, %c0_7] : memref<16x256xf32, #tpu.memory_space<vmem>>, vector<16x256xf32>
    tpu.vector_store %arg5[%c0_6, %c0_7], %7 {strides = array<i32>} : memref<16x256xf32, #tpu.memory_space<vmem>>, vector<16x256xf32>,
    %c3_i32 = arith.constant 3 : i32
    %9 = arith.cmpi eq, %arg2, %c3_i32 : i32
    %10 = arith.extui %9 : i1 to i32
    %c0_i32_8 = arith.constant 0 : i32
    %11 = arith.cmpi ne, %10, %c0_i32_8 : i32
    scf.if %11 {
      %c0_9 = arith.constant 0 : index
      %c0_10 = arith.constant 0 : index
      %12 = vector.load %arg5[%c0_9, %c0_10] : memref<16x256xf32, #tpu.memory_space<vmem>>, vector<16x256xf32>
      %13 = tpu.iota {dimensions = array<i32: 1>} : vector<16x256xi32>
      %c160_i32 = arith.constant 160 : i32
      %14 = vector.broadcast %c160_i32 : i32 to vector<16x256xi32>
      %15 = arith.cmpi slt, %13, %14 : vector<16x256xi32>
      %cst_11 = arith.constant 0.000000e+00 : f32
      %16 = vector.broadcast %cst_11 : f32 to vector<16x256xf32>
      %17 = arith.select %15, %12, %16 : vector<16x256xi1>, vector<16x256xf32>
      %cst_12 = arith.constant dense<0.000000e+00> : vector<16xf32>
      %18 = vector.multi_reduction <add>, %17, %cst_12 [1] : vector<16x256xf32> to vector<16xf32>
      %19 = vector.shape_cast %18 : vector<16xf32> to vector<16x1xf32>
      %cst_13 = arith.constant 6.250000e-03 : f32
      %20 = vector.broadcast %cst_13 : f32 to vector<16x1xf32>
      %21 = arith.mulf %19, %20 : vector<16x1xf32>
      %22 = vector.broadcast %21 : vector<16x1xf32> to vector<16x256xf32>
      %23 = arith.subf %12, %22 : vector<16x256xf32>
      %cst_14 = arith.constant 9.99999996E-13 : f32
      %24 = vector.broadcast %cst_14 : f32 to vector<16x256xf32>
      %25 = arith.addf %23, %24 : vector<16x256xf32>
      %cst_15 = arith.constant 0xFF800000 : f32
      %26 = vector.broadcast %cst_15 : f32 to vector<16x256xf32>
      %27 = arith.select %15, %25, %26 : vector<16x256xi1>, vector<16x256xf32>
      %cst_16 = arith.constant dense<0xFF800000> : vector<16xf32>
      %28 = vector.multi_reduction <maximumf>, %27, %cst_16 [1] : vector<16x256xf32> to vector<16xf32>
      %29 = vector.shape_cast %28 : vector<16xf32> to vector<16x1xf32>
      %30 = vector.broadcast %29 : vector<16x1xf32> to vector<16x256xf32>
      %31 = arith.divf %25, %30 : vector<16x256xf32>
      %c0_17 = arith.constant 0 : index
      %c0_18 = arith.constant 0 : index
      %32 = vector.load %arg5[%c0_17, %c0_18] : memref<16x256xf32, #tpu.memory_space<vmem>>, vector<16x256xf32>
      tpu.vector_store %arg5[%c0_17, %c0_18], %31 {strides = array<i32>} : memref<16x256xf32, #tpu.memory_space<vmem>>, vector<16x256xf32>,
    } else {
    }
    return
  }
  func.func @transform_0(%arg0: i32, %arg1: i32, %arg2: i32) -> (i32, i32) {
    %c0_i32 = arith.constant 0 : i32
    return %arg0, %arg2 : i32, i32
  }
  func.func @transform_1(%arg0: i32, %arg1: i32, %arg2: i32) -> (i32, i32) {
    %c0_i32 = arith.constant 0 : i32
    return %arg2, %arg1 : i32, i32
  }
  func.func @transform_2(%arg0: i32, %arg1: i32, %arg2: i32) -> (i32, i32) {
    %c0_i32 = arith.constant 0 : i32
    return %arg0, %arg1 : i32, i32
  }
}

</mosaic_0001>

<bundles_post_ra>
// kernel: tpu_custom_call.1
= control target key start
LH: loop header
LB: loop body
LE: loop exit
PB: predicated region body
PF: predicated region fallthrough
CT: control target
= control target key end

     0   :  { %7 = vsyncpa [#allocation3], 0  ;;  %s1102_s0 = inlined_call_operand.hbm [shape: bf16[16,512], index: 0, kind: input, shape index: {}]   ;;  %s1103_s1 = inlined_call_operand.hbm [shape: bf16[512,256], index: 1, kind: input, shape index: {}]   ;;  %s1104_s2 = inlined_call_operand.hbm [shape: f32[16,256], index: 2, kind: output, shape index: {}]  }
   0x1   :  { %9 = vsyncpa [#allocation3 + $0x1], 0 }
   0x2   :  { %10 = vsyncpa [#allocation6], 0 }
   0x3   :  { %12 = vsyncpa [#allocation6 + $0x1], 0 }
   0x4   :  { %13 = vsyncpa [#allocation4], 0  ;;  %s876_s9 = smov 0   ;;  %s878_s10 = smov 0  }
   0x5   :  { %s880_s11 = smov 0   ;;  %s882_s12 = smov 0  }
   0x6   :  { %s884_s13 = smov 0   ;;  %s886_s14 = smov 0  }
   0x7 LB: > { %s561_s15 = sadd.s32 4294967295, %s847_s14   ;;  %s31_s16 = sadd.s32 1, %s843_s13  ;;  %s847_s14 = sphi %s886_s14, %s19_s14   ;;  %s843_s13 = sphi %s884_s13, %s1117_s13   ;;  %s839_s12 = sphi %s882_s12, %s1116_s12   ;;  %s835_s11 = sphi %s880_s11, %s1115_s11   ;;  %s831_s10 = sphi %s878_s10, %s1114_s10   ;;  %s827_s9 = sphi %s876_s9, %s1113_s9  }
   0x8   : > { %p32_p0 = scmp.ge.s32.totalorder %s31_s16, 4  ;;  %s47_s17 = sadd.s32 1, %s835_s11 }
   0x9   : > { %p54_p1 = scmp.ne.s32.totalorder %s835_s11, %s831_s10  ;;  %p55_p2 = scmp.eq.s32.totalorder %s847_s14, 0 }
   0xa   : > { %s1119_s16 = smov (%p32_p0, %s31_s16), 0  ;;  %p60_p4 = scmp.ne.s32.totalorder %s831_s10, %s827_s9 }
   0xb   : > { %p912_p3 = por %p55_p2, %p54_p1  ;;  %s43_s19 = ssub.s32 %s843_s13, %s1119_s16 }
   0xc   : > { %p61_p5 = scmp.eq.s32.totalorder %s561_s15, 0  ;;  %p45_p6 = scmp.eq.s32.totalorder %s43_s19, 0 }
   0xd   : > { %p613_p8 = scmp.lt.s32.totalorder %s847_s14, 4  ;;  %s930_s22 = sand.u32 1, %s835_s11  }
   0xe   : > { %p921_p7 = por %p61_p5, %p60_p4  ;;  %s565_s23 = sshll.u32 %s843_s13, 6 }
   0xf   : > { %s927_s21 = scalar_select %p45_p6, %s835_s11, %s47_s17  }
  0x10   : > { %s1107_s20 = scalar_select %p921_p7, 1, 0 }
  0x11   : > { %s564_s24 = sshll.u32 %s930_s22, 3  ;;  %s937_s27 = scalar_lea.hbm %s1102_s0, %s565_s23 }
  0x12   : > { %s144_s28 = scalar_lea.vmem [#allocation2], %s564_s24  ;;  %p941_p9 = pnand %p613_p8, %p912_p3 }
  0x13   : > { %s153_s29 = sshll.u32 %s144_s28, 4  ;;  %s141_s3 = scalar_lea.sflag [#allocation3], %s930_s22  ;;  %s945_s29 = int_to_ptr.vmem [resolvable:$true] %s153_s29 }
  0x14   : > { %s703_s4 = scalar_lea.hbm %s937_s27, 128  ;;  %p705_p12 = pneg %p941_p9 }
  0x15   : > { %p704_p11 = scmp.ne.s32.totalorder %s937_s27, %s703_s4  ;;  %s708_s7 = scalar_lea.hbm %s1102_s0, 512 }
  0x16   : > { %p709_p1 = scmp.lt.u32.totalorder %s937_s27, %s1102_s0  ;;  %p710_p2 = scmp.lt.u32.totalorder %s708_s7, %s703_s4 }
  0x17   : > { %p706_p13 = pnand %p705_p12, %p704_p11  ;;  %p712_p4 = scmp.lt.u32.totalorder %s703_s4, %s937_s27 }
  0x18   : > { %p711_p3 = por %p710_p2, %p709_p1 }
  0x19   : > { %p707_p0 = pneg %p706_p13 }
  0x1a   : > { %p713_p5 = por %p712_p4, %p711_p3 }
  0x1c   : > { %p714_p6 = pnand %p713_p5, %p707_p0 }
  0x1e   : > { %717 = shalt.err (!%p714_p6)
}
  0x1f   : > { %s718_s17 = scalar_lea.vmem %s945_s29, 128  ;;  %s849_s18 = smov [#allocation2]  }
  0x20   : > { %p719_p8 = scmp.ne.s32.totalorder %s945_s29, %s718_s17  ;;  %s723_s19 = sshll.u32 %s849_s18, 4  ;;  %s724_s19 = int_to_ptr.vmem [resolvable:$false] %s723_s19 }
  0x21   : > { %s725_s23 = scalar_lea.vmem %s724_s19, 256  ;;  %p726_p10 = scmp.lt.s32.totalorder %s945_s29, %s724_s19 }
  0x22   : > { %p721_p11 = pnand %p719_p8, %p705_p12  ;;  %p727_p1 = scmp.lt.s32.totalorder %s725_s23, %s718_s17 }
  0x24   : > { %p722_p13 = pneg %p721_p11  ;;  %p728_p2 = por %p727_p1, %p726_p10 }
  0x26   : > { %p729_p3 = pnand %p728_p2, %p722_p13 }
  0x28   : > { %732 = shalt.err (!%p729_p3)
}
  0x29   : > { %s850_s24 = smov 256   ;;  %s851_s25 = smov 64  }
  0x2a   : > { %s852_s26 = smov 4   ;;  %p185_p0 = scmp.lt.s32.totalorder %s847_s14, 5 }
  0x2b   : > { %609 = dma.hbm_to_vmem [thread:$0]  (!%p941_p9), %s937_s27, 128, %s945_s29, %s141_s3, %s850_s24, %s851_s25, %s852_s26  }
  0x2c   : > { %s566_s28 = sshll.u32 %s930_s22, 7  ;;  %s597_s4 = sshll.u32 %s843_s13, 11 }
  0x2d   : > { %p1109_p10 = scmp.ge.s32.totalorder %s847_s14, 1  ;;  %s988_s8 = scalar_lea.hbm %s1103_s1, %s597_s4 }
  0x2e   : > { %s167_s9 = scalar_lea.vmem [#allocation5], %s566_s28  ;;  %s164_s27 = scalar_lea.sflag [#allocation6], %s930_s22 }
  0x2f   : > { %p981_p4 = pnand %p1109_p10, %p185_p0  ;;  %s177_s17 = sshll.u32 %s167_s9, 4  ;;  %s990_s17 = int_to_ptr.vmem [resolvable:$true] %s177_s17 }
  0x30   : > { %s733_s29 = scalar_lea.hbm %s988_s8, 2048  ;;  %s738_s19 = scalar_lea.hbm %s1103_s1, 8192 }
  0x31   : > { %p734_p5 = scmp.ne.s32.totalorder %s988_s8, %s733_s29  ;;  %p739_p11 = scmp.lt.u32.totalorder %s988_s8, %s1103_s1 }
  0x32   : > { %p740_p13 = scmp.lt.u32.totalorder %s738_s19, %s733_s29  ;;  %p742_p2 = scmp.lt.u32.totalorder %s733_s29, %s988_s8 }
  0x33   : > { %p736_p6 = pnand %p734_p5, %p705_p12 }
  0x34   : > { %p741_p1 = por %p740_p13, %p739_p11 }
  0x35   : > { %p737_p8 = pneg %p736_p6 }
  0x36   : > { %p743_p3 = por %p742_p2, %p741_p1 }
  0x38   : > { %p744_p0 = pnand %p743_p3, %p737_p8 }
  0x3a   : > { %747 = shalt.err (!%p744_p0)
}
  0x3b   : > { %s748_s25 = scalar_lea.vmem %s990_s17, 2048  ;;  %s853_s26 = smov [#allocation5]  }
  0x3c   : > { %p749_p10 = scmp.ne.s32.totalorder %s990_s17, %s748_s25  ;;  %s753_s28 = sshll.u32 %s853_s26, 4  ;;  %s754_s28 = int_to_ptr.vmem [resolvable:$false] %s753_s28 }
  0x3d   : > { %s755_s4 = scalar_lea.vmem %s754_s28, 4096  ;;  %p756_p7 = scmp.lt.s32.totalorder %s990_s17, %s754_s28 }
  0x3e   : > { %p751_p5 = pnand %p749_p10, %p705_p12  ;;  %p757_p11 = scmp.lt.s32.totalorder %s755_s4, %s748_s25 }
  0x40   : > { %p752_p6 = pneg %p751_p5  ;;  %p758_p13 = por %p757_p11, %p756_p7 }
  0x42   : > { %p759_p1 = pnand %p758_p13, %p752_p6 }
  0x44   : > { %762 = shalt.err (!%p759_p1)
}
  0x45   : > { %s854_s6 = smov 128   ;;  %s855_s7 = smov 8  }
  0x46   : > { %612 = dma.hbm_to_vmem [thread:$0]  (!%p941_p9), %s988_s8, 2048, %s990_s17, %s164_s27, %s854_s6, %s854_s6, %s855_s7  }
  0x47   : > { %189 = sbr.rel (%p981_p4) target bundleno = 687 (0x2af), region = 28  ;;  %s191_s9 = sand.u32 (!%p981_p4), 1, %s831_s10  }
  0x48   : > { %s571_s29 = sshll.u32 (!%p981_p4), %s191_s9, 3  ;;  %s192_s3 = scalar_lea.sflag (!%p981_p4), [#allocation3], %s191_s9 }
  0x49   : > { %s1021_s18 = scalar_lea.vmem (!%p981_p4), [#allocation2], %s571_s29  ;;  %p1111_p7 = scmp.ne.s32.totalorder (!%p981_p4), %s1107_s20, 0 }
  0x4e   : > { %814 = dma.done.wait (%p1111_p7), %s192_s3, 128  }
  0x4f   : > { %816 = vsyncadd (%p1111_p7), %s192_s3, 4294967168  ;;  %s572_s19 = sshll.u32 %s191_s9, 7  ;;  %s201_s30 = scalar_lea.sflag [#allocation6], %s191_s9 }
  0x50   : > { %s1027_s22 = scalar_lea.vmem [#allocation5], %s572_s19 }
  0x51   : > { %818 = dma.done.wait (%p1111_p7), %s201_s30, 2048  }
  0x52   : > { %820 = vsyncadd (%p1111_p7), %s201_s30, 4294965248  ;;  %p573_p9 = scmp.ne.s32.totalorder %s839_s12, 0 }
  0x53   : > { %v856_v0 = vmov (!%p573_p9), 0.0  }
  0x54   : > { %234 = sbr.rel (%p573_p9) target bundleno = 91 (0x5b), region = 40  ;;  %235 = vst [vmem:[#allocation7] sm:$0xff] (!%p573_p9), %v856_v0  ;;  %236 = vst [vmem:[#allocation7 + $0x8] sm:$0xff] (!%p573_p9), %v856_v0 }
  0x55   : > { %237 = vst [vmem:[#allocation7 + $0x10] sm:$0xff] (!%p573_p9), %v856_v0  ;;  %238 = vst [vmem:[#allocation7 + $0x18] sm:$0xff] (!%p573_p9), %v856_v0 }
  0x5b PF: > { %v674_v1 = vld [vmem:[%s1027_s22 + $0x4] ss:$8 sps:$4 sm:$0xff]   ;;  %v676_v2 = vld [vmem:[%s1027_s22] ss:$8 sps:$4 sm:$0xff]   ;;  %v857_v3 = vmov 0   ;;  %v698_v18 = vld [vmem:[%s1021_s18] sm:$0xff]  }
  0x5c   : > { %379 = vmatprep.mubr.bf16.mxu0 %v857_v3  ;;  %347 = vmatprep.subr.bf16.mxu0 %v674_v1  ;;  %v677_v4 = vld [vmem:[%s1027_s22 + $0x14] ss:$8 sps:$4 sm:$0xff]   ;;  %v679_v5 = vld [vmem:[%s1027_s22 + $0x10] ss:$8 sps:$4 sm:$0xff]   ;;  %v680_v6 = vld [vmem:[%s1027_s22 + $0x24] ss:$8 sps:$4 sm:$0xff]  }
  0x5d   : > { %348 = vmatpush1.bf16.msra.mxu0 %v676_v2  ;;  %v682_v7 = vld [vmem:[%s1027_s22 + $0x20] ss:$8 sps:$4 sm:$0xff]   ;;  %v683_v8 = vld [vmem:[%s1027_s22 + $0x34] ss:$8 sps:$4 sm:$0xff]   ;;  %v685_v9 = vld [vmem:[%s1027_s22 + $0x30] ss:$8 sps:$4 sm:$0xff]  }
  0x5e   : > { %349 = vmatprep.subr.bf16.mxu0 %v677_v4  ;;  %v686_v10 = vld [vmem:[%s1027_s22 + $0x44] ss:$8 sps:$4 sm:$0xff]   ;;  %v688_v11 = vld [vmem:[%s1027_s22 + $0x40] ss:$8 sps:$4 sm:$0xff]   ;;  %v689_v12 = vld [vmem:[%s1027_s22 + $0x54] ss:$8 sps:$4 sm:$0xff]  }
  0x5f   : > { %v691_v13 = vld [vmem:[%s1027_s22 + $0x50] ss:$8 sps:$4 sm:$0xff]   ;;  %v692_v14 = vld [vmem:[%s1027_s22 + $0x64] ss:$8 sps:$4 sm:$0xff]   ;;  %v694_v15 = vld [vmem:[%s1027_s22 + $0x60] ss:$8 sps:$4 sm:$0xff]  }
  0x60   : > { %v695_v16 = vld [vmem:[%s1027_s22 + $0x74] ss:$8 sps:$4 sm:$0xff]   ;;  %v697_v17 = vld [vmem:[%s1027_s22 + $0x70] ss:$8 sps:$4 sm:$0xff]   ;;  %v239_v19 = vld [vmem:[#allocation7] sm:$0xff]  ;;  %p591_p12 = scmp.ne.s32.totalorder %s839_s12, 3 }
  0x61   : > { %350 = vmatpush1.bf16.msra.mxu0 %v679_v5  ;;  %v240_v20 = vld [vmem:[#allocation7 + $0x8] sm:$0xff]  ;;  %v241_v22 = vld [vmem:[#allocation7 + $0x10] sm:$0xff]  ;;  %v242_v25 = vld [vmem:[#allocation7 + $0x18] sm:$0xff]  ;;  %v406_v31 = vlaneseq (!%p591_p12) }
  0x62   : > { %351 = vmatprep.subr.bf16.mxu0 %v680_v6 }
  0x63   : > { %v407_v32 = vand.u32 (!%p591_p12), 127, %v406_v31 }
  0x65   : > { %352 = vmatpush1.bf16.msra.mxu0 %v682_v7  ;;  %v408_v34 = vadd.s32 (!%p591_p12), 128, %v407_v32 }
  0x66   : > { %353 = vmatprep.subr.bf16.mxu0 %v683_v8 }
  0x67   : > { %vm410_vm0 = vcmp.lt.s32.totalorder (!%p591_p12), %v408_v34, 160 }
  0x69   : > { %354 = vmatpush1.bf16.msra.mxu0 %v685_v9 }
  0x6a   : > { %355 = vmatprep.subr.bf16.mxu0 %v686_v10 }
  0x6d   : > { %356 = vmatpush1.bf16.msra.mxu0 %v688_v11 }
  0x6e   : > { %357 = vmatprep.subr.bf16.mxu0 %v689_v12 }
  0x71   : > { %358 = vmatpush1.bf16.msra.mxu0 %v691_v13 }
  0x72   : > { %359 = vmatprep.subr.bf16.mxu0 %v692_v14 }
  0x75   : > { %360 = vmatpush1.bf16.msra.mxu0 %v694_v15 }
  0x76   : > { %361 = vmatprep.subr.bf16.mxu0 %v695_v16 }
  0x79   : > { %362 = vmatpush1.bf16.msra.mxu0 %v697_v17 }
  0x7c   : > { %380 = vmatmul.mubr.bf16.vlgmr.msra.gmra.mrb[0].mxu0 %v698_v18 }
 0x14f   : > { %v381_v21 = vpop.f32.mrb[0].mxu0  ;;  %401 = sbr.rel (%p591_p12) target bundleno = 661 (0x295), region = 44 }
 0x150   : > { %v390_v23 = vadd.f32 %v381_v21, %v239_v19  ;;  %v383_v24 = vpop.f32.mrb[1].mxu0 }
 0x151   : > { %v391_v26 = vadd.f32 %v383_v24, %v240_v20  ;;  %v385_v27 = vpop.f32.mrb[2].mxu0 }
 0x152   : > { %394 = vst [vmem:[#allocation7] sm:$0xff] %v390_v23  ;;  %v392_v28 = vadd.f32 %v385_v27, %v241_v22  ;;  %v387_v29 = vpop.f32.mrb[3].mxu0 }
 0x153   : > { %395 = vst [vmem:[#allocation7 + $0x8] sm:$0xff] %v391_v26  ;;  %v393_v30 = vadd.f32 %v387_v29, %v242_v25 }
 0x154   : > { %396 = vst [vmem:[#allocation7 + $0x10] sm:$0xff] %v392_v28 }
 0x155   : > { %397 = vst [vmem:[#allocation7 + $0x18] sm:$0xff] %v393_v30 }
 0x159   : > { %v402_v36 = vld [vmem:[#allocation7] sm:$0xff] }
 0x15a   : > { %v403_v33 = vld [vmem:[#allocation7 + $0x8] sm:$0xff] }
 0x15b   : > { %v412_v37 = vsel %vm410_vm0, %v403_v33, 0.0  ;;  %v404_v38 = vld [vmem:[#allocation7 + $0x10] sm:$0xff] }
 0x15c   : > { %v405_v35 = vld [vmem:[#allocation7 + $0x18] sm:$0xff]  ;;  %v415_v40 = vadd.f32 %v412_v37, %v402_v36 }
 0x15d   : > { %v414_v39 = vsel %vm410_vm0, %v405_v35, 0.0 }
 0x15e   : > { %416 = vadd.xlane.f32.xlu0 %v415_v40  ;;  %v418_v41 = vadd.f32 %v414_v39, %v404_v38 }
 0x162   : > { %419 = vadd.xlane.f32.xlu0 %v418_v41 }
 0x1eb   : > { %v417_v42 = vpop.xlane.xlu0 %416 }
 0x1ec   : > { %v421_v43 = vmul.f32 0.00625, %v417_v42 }
 0x1ee   : > { %v424_v44 = vsub.f32 %v403_v33, %v421_v43  ;;  %v423_v45 = vsub.f32 %v402_v36, %v421_v43 }
 0x1ef   : > { %v420_v46 = vpop.xlane.xlu0 %419 }
 0x1f0   : > { %v422_v47 = vmul.f32 0.00625, %v420_v46  ;;  %v427_v48 = vadd.f32 1e-12, %v423_v45  ;;  %v428_v49 = vadd.f32 1e-12, %v424_v44 }
 0x1f2   : > { %v425_v50 = vsub.f32 %v404_v38, %v422_v47  ;;  %v426_v51 = vsub.f32 %v405_v35, %v422_v47  ;;  %v432_v52 = vsel %vm410_vm0, %v428_v49, -inf }
 0x1f3   : > { %v435_v53 = vmax.f32 %v427_v48, %v432_v52 }
 0x1f4   : > { %v429_v54 = vadd.f32 1e-12, %v425_v50  ;;  %v430_v55 = vadd.f32 1e-12, %v426_v51 }
 0x1f5   : > { %436 = vmax.xlane.f32.xlu1 %v435_v53 }
 0x1f6   : > { %v434_v56 = vsel %vm410_vm0, %v430_v55, -inf }
 0x1f7   : > { %v438_v57 = vmax.f32 %v429_v54, %v434_v56 }
 0x1f9   : > { %439 = vmax.xlane.f32.xlu1 %v438_v57 }
 0x282   : > { %v437_v58 = vpop.xlane.xlu1 %436 }
 0x283   : > { %699 = vrcp.f32 %v437_v58 }
 0x286   : > { %v440_v59 = vpop.xlane.xlu1 %439 }
 0x287   : > { %701 = vrcp.f32 %v440_v59 }
 0x28d   : > { %v700_v60 = vpop.eup %699 }
 0x28e   : > { %v442_v61 = vmul.f32 %v700_v60, %v427_v48  ;;  %v443_v62 = vmul.f32 %v700_v60, %v428_v49 }
 0x290   : > { %447 = vst [vmem:[#allocation7] sm:$0xff] %v442_v61  ;;  %448 = vst [vmem:[#allocation7 + $0x8] sm:$0xff] %v443_v62 }
 0x291   : > { %v702_v63 = vpop.eup %701 }
 0x292   : > { %v445_v0 = vmul.f32 %v702_v63, %v429_v54  ;;  %v446_v1 = vmul.f32 %v702_v63, %v430_v55 }
 0x294   : > { %449 = vst [vmem:[#allocation7 + $0x10] sm:$0xff] %v445_v0  ;;  %450 = vst [vmem:[#allocation7 + $0x18] sm:$0xff] %v446_v1 }
 0x295 PF: > { %p1058_p4 = scmp.eq.s32.totalorder %s561_s15, 3  ;;  %s858_s20 = smov [#allocation7]  }
 0x296   : > { %s463_s5 = sshll.u32 %s858_s20, 4  ;;  %s464_s5 = int_to_ptr.vmem [resolvable:$true] %s463_s5 }
 0x297   : > { %s763_s8 = scalar_lea.vmem %s464_s5, 512  ;;  %p770_p0 = scmp.lt.s32.totalorder %s464_s5, %s464_s5 }
 0x298   : > { %p764_p8 = scmp.ne.s32.totalorder %s464_s5, %s763_s8  ;;  %p771_p10 = scmp.lt.s32.totalorder %s763_s8, %s763_s8 }
 0x29a   : > { %p765_p2 = pnand %p764_p8, %p1058_p4  ;;  %p772_p5 = por %p771_p10, %p770_p0 }
 0x29c   : > { %p766_p3 = pneg %p765_p2 }
 0x29e   : > { %p773_p6 = pnand %p772_p5, %p766_p3 }
 0x2a0   : > { %776 = shalt.err (!%p773_p6)
}
 0x2a1   : > { %s777_s15 = scalar_lea.hbm %s1104_s2, 512 }
 0x2a2   : > { %p778_p11 = scmp.ne.s32.totalorder %s1104_s2, %s777_s15  ;;  %p783_p7 = scmp.lt.u32.totalorder %s777_s15, %s1104_s2 }
 0x2a4   : > { %p779_p13 = pnand %p778_p11, %p1058_p4 }
 0x2a6   : > { %p780_p1 = pneg %p779_p13 }
 0x2a8   : > { %p785_p9 = pnand %p783_p7, %p780_p1 }
 0x2aa   : > { %788 = shalt.err (!%p785_p9)
}
 0x2ab   : > { %s859_s28 = smov 256   ;;  %s860_s4 = smov 16  }
 0x2ac   : > { %603 = dma.vmem_to_hbm [thread:$0]  (%p1058_p4), %s464_s5, 512, %s1104_s2, [#allocation4], %s859_s28, %s859_s28, %s860_s4  }
 0x2ad   : > { %822 = dma.done.wait (%p1058_p4), [#allocation4], 512  }
 0x2ae   : > { %824 = vsyncadd (%p1058_p4), [#allocation4], 4294966784 }
 0x2af PF: > { %s19_s14 = sadd.s32 1, %s847_s14   ;;  %s1113_s9 = smov %s831_s10 }
 0x2b0   : > { %p16_p12 = scmp.ge.s32.totalorder %s19_s14, 6   ;;  %s1114_s10 = smov %s835_s11 }
 0x2b1   : > { %s1115_s11 = smov %s927_s21  ;;  %s1116_s12 = smov %s843_s13 }
 0x2b2   : > { %s1117_s13 = smov %s1119_s16  ;;  %18 = sbr.rel (!%p16_p12) target bundleno = 7 (0x7), region = 87 }
 0x2b9   :  { %479 = vsyncpa [#allocation3], 1 }
 0x2ba   :  { %481 = vsyncpa [#allocation3 + $0x1], 1 }
 0x2bb   :  { %482 = vsyncpa [#allocation6], 1 }
 0x2bc   :  { %484 = vsyncpa [#allocation6 + $0x1], 1 }
 0x2bd   :  { %485 = vsyncpa [#allocation4], 1 }
 0x2be   :  { %487 = vsyncpa [#allocation4 + $0x1], 1 }

</bundles_post_ra>
